<compile_context>
chip_gen: v6e
topology: v6e:2x2x1
jax: 0.10.0
libtpu: 0.0.40
codegen_flags: <defaults>
</compile_context>

<pallas_src>
import functools

import jax
import jax.numpy as jnp
from jax import lax
from jax.experimental import pallas as pl
from jax.experimental.pallas import tpu as pltpu


_MIB = 1024 * 1024
# Per-grid-step activation budget (x block + out block, before the 2x
# double-buffering).  8 MiB keeps the total plan comfortably inside v7x's
# 64 MiB VMEM while reaching the >=512-row-class tiles that sit near the HBM
# roofline on v5e/v6e.
# TODO(synk): pick per-generation budgets (4-6 MiB v7x, 8-16 MiB v6e).
_BLOCK_BUDGET = 8 * _MIB


def _dot_precision(dtype):
    # f32 inputs: force a true f32 matmul (multi-pass MXU); bf16 inputs are a
    # native single-pass either way.
    return (lax.Precision.HIGHEST if dtype == jnp.float32
            else lax.Precision.DEFAULT)


# ---------------------------------------------------------------------------
# Kernels
# ---------------------------------------------------------------------------
def _pool_conv_kernel(x_ref, w_ref, b_ref, o_ref, *, h_in, ho, w_odd):
    """2x2 avg-pool (ceil_mode, count_include_pad=False) + 1x1 conv + bias.

    x_ref: (nb, 2*TH, Wo, K)   K = 2*Cin -- the W-pair of each pooling window
                               is pre-folded into the contraction dim by a
                               free NHWC reshape in the wrapper.
    w_ref: (K, Cout)           row-stacked [w; w] 1x1 weight with the exact
                               0.25 average already folded in.
    b_ref: (1, Cout)           bias (f32).
    o_ref: (nb, TH, Wo, Cout)
    """
    x = x_ref[...]
    nb, th2, wo, k = x.shape
    th = th2 // 2
    h_odd = (h_in % 2) == 1
    prec = _dot_precision(x.dtype)

    if h_odd:
        # ceil_mode tail row: rows at/after the true H (partial-block garbage)
        # must not leak into the last valid output row.  Mask on the flattened
        # (M, 1) view so the iota sits on the sublane dim (layout friendly).
        m2 = nb * th2 * wo
        x2d = x.reshape(m2, k)
        mids = lax.broadcasted_iota(jnp.int32, (m2, 1), 0)
        in_row = pl.program_id(1) * th2 + (mids // wo) % th2
        x2d = jnp.where(in_row < h_in, x2d, 0)
        x = x2d.reshape(nb, th2, wo, k)

    # H-pair add: leading-dim reduce -> plain vector adds, no lane relayout.
    xh = x.reshape(nb, th, 2, wo, k).sum(axis=2)

    # Single MXU dot with K = 2*Cin (W-pair folded into the contraction).
    m = nb * th * wo
    y = jnp.dot(xh.reshape(m, k), w_ref[...],
                preferred_element_type=jnp.float32, precision=prec)

    # count_include_pad=False tail corrections: exact powers of two applied to
    # the f32 accumulator, only for the last output row / column.
    if h_odd or w_odd:
        mids = lax.broadcasted_iota(jnp.int32, (m, 1), 0)
        if h_odd:
            out_row = pl.program_id(1) * th + (mids // wo) % th
            y = jnp.where(out_row == ho - 1, y * 2.0, y)
        if w_odd:
            y = jnp.where(mids % wo == wo - 1, y * 2.0, y)

    y = y + b_ref[...]
    o_ref[...] = y.reshape(nb, th, wo, -1).astype(o_ref.dtype)


def _conv1x1_kernel(x_ref, w_ref, b_ref, o_ref):
    """Identity-pool case (stride == 1, dilation == 1): 1x1 conv + bias."""
    x = x_ref[...]
    nb, th, w, cin = x.shape
    prec = _dot_precision(x.dtype)
    y = jnp.dot(x.reshape(nb * th * w, cin), w_ref[...],
                preferred_element_type=jnp.float32, precision=prec)
    y = y + b_ref[...]
    o_ref[...] = y.reshape(nb, th, w, -1).astype(o_ref.dtype)


# ---------------------------------------------------------------------------
# Tiling / VMEM planning helpers
# ---------------------------------------------------------------------------
def _ceil_div(a, b):
    return -(-a // b)


def _plan_tiles(n, rows, bytes_per_row, m_per_row):
    """Pick (rows-per-block, images-per-block) for a cdiv (partial-tail) grid."""
    cap = max(1, min(rows, _BLOCK_BUDGET // max(1, bytes_per_row)))
    th = _ceil_div(rows, _ceil_div(rows, cap))     # balanced blocks near the cap
    nb = 1
    # Batch packing: late-stage 7x7-class images give a tiny matmul M; pack
    # several images per grid step so M = nb*rows*m_per_row reaches ~256.
    if th == rows and n > 1 and rows * m_per_row < 256:
        img_bytes = max(1, rows * bytes_per_row)
        nb = max(1, min(n, _ceil_div(256, rows * m_per_row),
                        _BLOCK_BUDGET // img_bytes))
    # Keep >= 2 grid steps when possible so ("parallel", "parallel") semantics
    # can split work across TensorCores (matters for N == 1 on v7x).
    if _ceil_div(n, nb) * _ceil_div(rows, th) == 1:
        if rows >= 2:
            th = _ceil_div(rows, 2)
        elif n >= 2:
            nb = _ceil_div(n, 2)
    return th, nb


def _vmem_limit(plan_bytes):
    # Double-buffered blocks + weight/bias + Mosaic-internal scratch headroom;
    # never below the ~32 MiB class so we don't regress the default limits.
    return int(min(112 * _MIB, max(32 * _MIB, plan_bytes + 4 * _MIB)))


# ---------------------------------------------------------------------------
# Wrappers
# ---------------------------------------------------------------------------
def _conv1x1(x, w_mat, b_mat):
    N, H, W, Cin = x.shape
    Cout = w_mat.shape[1]
    itm = x.dtype.itemsize
    row_bytes = W * (Cin + Cout) * itm
    th, nb = _plan_tiles(N, H, row_bytes, W)
    grid = (_ceil_div(N, nb), _ceil_div(H, th))
    plan = 2 * (nb * th * row_bytes + Cin * Cout * itm + Cout * 4)
    return pl.pallas_call(
        _conv1x1_kernel,
        out_shape=jax.ShapeDtypeStruct((N, H, W, Cout), x.dtype),
        grid_spec=pltpu.PrefetchScalarGridSpec(
            num_scalar_prefetch=0,
            grid=grid,
            in_specs=[
                pl.BlockSpec((nb, th, W, Cin), lambda n, h: (n, h, 0, 0)),
                pl.BlockSpec((Cin, Cout), lambda n, h: (0, 0)),
                pl.BlockSpec((1, Cout), lambda n, h: (0, 0)),
            ],
            out_specs=pl.BlockSpec((nb, th, W, Cout), lambda n, h: (n, h, 0, 0)),
        ),
        compiler_params=pltpu.CompilerParams(
            dimension_semantics=("parallel", "parallel"),
            vmem_limit_bytes=_vmem_limit(plan)),
    )(x, w_mat, b_mat)


def _pool_conv(x, w_mat, b_mat):
    N, H, W, Cin = x.shape
    Cout = w_mat.shape[1]
    Ho, Wo = _ceil_div(H, 2), _ceil_div(W, 2)
    w_odd = (W % 2) == 1

    # Fold the exact 2x2-average 1/4 into the weight (0.25 = 2^-2, exact in
    # f32/bf16); ceil_mode tail counts are fixed with power-of-two corrections
    # applied to the f32 accumulator inside the kernel.
    w_use = w_mat * jnp.asarray(0.25, dtype=w_mat.dtype)

    if w_odd:
        # TODO(synk): fold the single tail column in-kernel as well to drop
        # this (<=1-column, odd-W-only) HBM pad pass entirely.
        x = jnp.pad(x, ((0, 0), (0, 0), (0, 1), (0, 0)))

    # Fold the W-pair of the pool into the matmul K dim: free metadata reshape
    # in NHWC (W and Cin are the contiguous trailing dims).
    K = 2 * Cin
    x2 = x.reshape(N, H, Wo, K)
    w2 = jnp.concatenate([w_use, w_use], axis=0)          # (2*Cin, Cout)

    itm = x.dtype.itemsize
    row_bytes = 2 * Wo * K * itm + Wo * Cout * itm
    th, nb = _plan_tiles(N, Ho, row_bytes, Wo)
    grid = (_ceil_div(N, nb), _ceil_div(Ho, th))

    kernel = functools.partial(_pool_conv_kernel, h_in=H, ho=Ho, w_odd=w_odd)
    plan = 2 * (nb * th * row_bytes + K * Cout * itm + Cout * 4)
    # TODO(synk): single-buffer the constant-index weight/bias blocks
    # (pipeline_mode=pl.Buffered(1)) to save a redundant weight buffer on v7x.

    return pl.pallas_call(
        kernel,
        out_shape=jax.ShapeDtypeStruct((N, Ho, Wo, Cout), x.dtype),
        grid_spec=pltpu.PrefetchScalarGridSpec(
            num_scalar_prefetch=0,
            grid=grid,
            in_specs=[
                pl.BlockSpec((nb, 2 * th, Wo, K), lambda n, h: (n, h, 0, 0)),
                pl.BlockSpec((K, Cout), lambda n, h: (0, 0)),
                pl.BlockSpec((1, Cout), lambda n, h: (0, 0)),
            ],
            out_specs=pl.BlockSpec((nb, th, Wo, Cout), lambda n, h: (n, h, 0, 0)),
        ),
        compiler_params=pltpu.CompilerParams(
            dimension_semantics=("parallel", "parallel"),
            vmem_limit_bytes=_vmem_limit(plan)),
    )(x2, w2, b_mat)


def downsample_avg(x, weight, bias, *, stride=2, dilation=1):
    """DownsampleAvg forward, NHWC (channels-last).

    x:      (N, H, W, Cin)
    weight: (Cout, Cin, 1, 1)   (PyTorch conv-weight layout)
    bias:   (Cout,)
    returns (N, ceil(H/2), ceil(W/2), Cout) in x.dtype (or (N, H, W, Cout) if
    stride == 1 and dilation == 1).
    """
    N, H, W, Cin = x.shape
    Cout = weight.shape[0]
    # Tiny parameter reshapes: x/w stay in the input dtype (the MXU accumulates
    # in f32 via preferred_element_type); bias stays f32.
    w_mat = weight.reshape(Cout, Cin).T.astype(x.dtype)    # (Cin, Cout)
    b_mat = bias.reshape(1, Cout).astype(jnp.float32)

    avg_stride = stride if dilation == 1 else 1
    do_pool = stride > 1 or dilation > 1
    if do_pool and not (avg_stride == 2 and dilation == 1):
        # TODO(synk): AvgPool2dSame path (dilation > 1 / avg_stride == 1) and
        # stride > 2 are not implemented.
        raise NotImplementedError("only the standard avg_stride==2 path is implemented")

    if not do_pool:
        return _conv1x1(x, w_mat, b_mat)
    return _pool_conv(x, w_mat, b_mat)


def downsample_avg_nchw(x_nchw, weight, bias, *, stride=2, dilation=1):
    """Compatibility shim for callers using the PyTorch NCHW convention.

    The boundary transposes exist only for layout conversion; in a
    channels-last pipeline call `downsample_avg` directly.
    """
    x = jnp.transpose(x_nchw, (0, 2, 3, 1))
    y = downsample_avg(x, weight, bias, stride=stride, dilation=dilation)
    return jnp.transpose(y, (0, 3, 1, 2))


# ---------------------------------------------------------------------------
# Pure-JAX reference (handles ceil_mode + count_include_pad=False)
# ---------------------------------------------------------------------------
def _reference_nhwc(x, weight, bias, *, stride=2):
    N, H, W, Cin = x.shape
    Cout = weight.shape[0]
    xf = x.astype(jnp.float32)
    if stride > 1:
        Ho, Wo = -(-H // 2), -(-W // 2)
        xp = jnp.pad(xf, ((0, 0), (0, 2 * Ho - H), (0, 2 * Wo - W), (0, 0)))
        sums = xp.reshape(N, Ho, 2, Wo, 2, Cin).sum(axis=(2, 4))
        cnt = jnp.pad(jnp.ones((H, W), jnp.float32),
                      ((0, 2 * Ho - H), (0, 2 * Wo - W)))
        cnt = cnt.reshape(Ho, 2, Wo, 2).sum(axis=(1, 3))
        pooled = sums / cnt[None, :, :, None]
    else:
        pooled = xf
    w = weight.reshape(Cout, Cin).astype(jnp.float32)
    y = jnp.einsum("nhwc,oc->nhwo", pooled, w, precision=lax.Precision.HIGHEST)
    return y + bias.astype(jnp.float32)


if __name__ == "__main__":
    key = jax.random.PRNGKey(0)
    k1, k2, k3, k4, k5 = jax.random.split(key, 5)

    N, Cin, Cout, H, W = 2, 4, 8, 16, 16
    x = jax.random.normal(k1, (N, H, W, Cin), jnp.float32)            # NHWC
    weight = jax.random.normal(k2, (Cout, Cin, 1, 1), jnp.float32) * 0.1
    bias = jax.random.normal(k3, (Cout,), jnp.float32) * 0.1

    fwd = jax.jit(functools.partial(downsample_avg, stride=2, dilation=1))

    # Even H/W hot path: folded K, no padding, no corrections.
    out = jax.block_until_ready(fwd(x, weight, bias))
    ref = _reference_nhwc(x, weight, bias, stride=2)
    assert out.shape == (N, H // 2, W // 2, Cout), out.shape
    assert jnp.allclose(out, ref, atol=1e-5, rtol=1e-5), "even-path mismatch"

    # Odd H, even W: ceil_mode tail row handled fully in-kernel (no HBM pad).
    x_oh = jax.random.normal(k4, (N, 9, 16, Cin), jnp.float32)
    out_oh = jax.block_until_ready(fwd(x_oh, weight, bias))
    ref_oh = _reference_nhwc(x_oh, weight, bias, stride=2)
    assert out_oh.shape == (N, 5, 8, Cout), out_oh.shape
    assert jnp.allclose(out_oh, ref_oh, atol=1e-5, rtol=1e-5), "odd-H mismatch"

    # Odd H and odd W: exercises the 1-column pad + last-col/row corrections.
    x_odd = jax.random.normal(k5, (N, 15, 17, Cin), jnp.float32)
    out_odd = jax.block_until_ready(fwd(x_odd, weight, bias))
    ref_odd = _reference_nhwc(x_odd, weight, bias, stride=2)
    assert out_odd.shape == (N, 8, 9, Cout), out_odd.shape
    assert jnp.allclose(out_odd, ref_odd, atol=1e-5, rtol=1e-5), "odd-HW mismatch"

    # stride=1 -> identity pool, conv-only kernel.
    fwd1 = jax.jit(functools.partial(downsample_avg, stride=1, dilation=1))
    out1 = jax.block_until_ready(fwd1(x, weight, bias))
    ref1 = _reference_nhwc(x, weight, bias, stride=1)
    assert jnp.allclose(out1, ref1, atol=1e-5, rtol=1e-5), "conv-only mismatch"

    # NCHW compatibility wrapper matches the PyTorch layout convention.
    x_nchw = jnp.transpose(x, (0, 3, 1, 2))
    out_nchw = jax.block_until_ready(downsample_avg_nchw(x_nchw, weight, bias))
    assert jnp.allclose(out_nchw, jnp.transpose(ref, (0, 3, 1, 2)),
                        atol=1e-5, rtol=1e-5), "nchw wrapper mismatch"

    print("KERNEL_OK")
</pallas_src>

<mosaic_0001>
module attributes {stable_mosaic.version = 11 : i64} {
  func.func @_pool_conv_kernel(%arg0: i32, %arg1: i32, %arg2: memref<2x8x8x8xf32, #tpu.memory_space<vmem>>, %arg3: memref<8x8xf32, #tpu.memory_space<vmem>>, %arg4: memref<1x8xf32, #tpu.memory_space<vmem>>, %arg5: memref<2x4x8x8xf32, #tpu.memory_space<vmem>>) attributes {dimension_semantics = [#tpu.dimension_semantics<parallel>, #tpu.dimension_semantics<parallel>], iteration_bounds = array<i64: 1, 2>, scalar_prefetch = 0 : i64, scratch_operands = 0 : i64, tpu.core_type = #tpu.core_type<tc>, window_params = [{transform_indices = @transform_0, window_bounds = array<i64: 2, 8, 8, 8>}, {pipeline_mode = #tpu.pipeline_mode<synchronous>, transform_indices = @transform_1, window_bounds = array<i64: 8, 8>}, {pipeline_mode = #tpu.pipeline_mode<synchronous>, transform_indices = @transform_2, window_bounds = array<i64: 1, 8>}, {transform_indices = @transform_3, window_bounds = array<i64: 2, 4, 8, 8>}]} {
    %c0 = arith.constant 0 : index
    %c0_0 = arith.constant 0 : index
    %c0_1 = arith.constant 0 : index
    %c0_2 = arith.constant 0 : index
    %0 = vector.load %arg2[%c0, %c0_0, %c0_1, %c0_2] : memref<2x8x8x8xf32, #tpu.memory_space<vmem>>, vector<2x8x8x8xf32>
    %1 = vector.shape_cast %0 : vector<2x8x8x8xf32> to vector<2x4x2x8x8xf32>
    %cst = arith.constant dense<0.000000e+00> : vector<2x4x8x8xf32>
    %2 = vector.multi_reduction <add>, %1, %cst [2] : vector<2x4x2x8x8xf32> to vector<2x4x8x8xf32>
    %3 = vector.shape_cast %2 : vector<2x4x8x8xf32> to vector<64x8xf32>
    %c0_3 = arith.constant 0 : index
    %c0_4 = arith.constant 0 : index
    %4 = vector.load %arg3[%c0_3, %c0_4] : memref<8x8xf32, #tpu.memory_space<vmem>>, vector<8x8xf32>
    %cst_5 = arith.constant dense<0.000000e+00> : vector<64x8xf32>
    %5 = tpu.matmul %3, %4, %cst_5 {dimension_numbers = #tpu.dot_dimension_numbers<[1], [0], [0], [1], [0, 0, 1, 1], [], []>, precision = #tpu.contract_precision<fp32>} : vector<64x8xf32>, vector<8x8xf32>, vector<64x8xf32> -> vector<64x8xf32>
    %c0_6 = arith.constant 0 : index
    %c0_7 = arith.constant 0 : index
    %6 = vector.load %arg4[%c0_6, %c0_7] : memref<1x8xf32, #tpu.memory_space<vmem>>, vector<1x8xf32>
    %7 = vector.broadcast %6 : vector<1x8xf32> to vector<64x8xf32>
    %8 = arith.addf %5, %7 : vector<64x8xf32>
    %9 = vector.shape_cast %8 : vector<64x8xf32> to vector<2x4x8x8xf32>
    %c0_8 = arith.constant 0 : index
    %c0_9 = arith.constant 0 : index
    %c0_10 = arith.constant 0 : index
    %c0_11 = arith.constant 0 : index
    %10 = vector.load %arg5[%c0_8, %c0_9, %c0_10, %c0_11] : memref<2x4x8x8xf32, #tpu.memory_space<vmem>>, vector<2x4x8x8xf32>
    tpu.vector_store %arg5[%c0_8, %c0_9, %c0_10, %c0_11], %9 {strides = array<i32>} : memref<2x4x8x8xf32, #tpu.memory_space<vmem>>, vector<2x4x8x8xf32>,
    return
  }
  func.func @transform_0(%arg0: i32, %arg1: i32) -> (i32, i32, i32, i32) {
    %c0_i32 = arith.constant 0 : i32
    %c0_i32_0 = arith.constant 0 : i32
    %c0_i32_1 = arith.constant 0 : i32
    return %arg0, %arg1, %c0_i32, %c0_i32_0 : i32, i32, i32, i32
  }
  func.func @transform_1(%arg0: i32, %arg1: i32) -> (i32, i32) {
    %c0_i32 = arith.constant 0 : i32
    %c0_i32_0 = arith.constant 0 : i32
    %c0_i32_1 = arith.constant 0 : i32
    return %c0_i32, %c0_i32_0 : i32, i32
  }
  func.func @transform_2(%arg0: i32, %arg1: i32) -> (i32, i32) {
    %c0_i32 = arith.constant 0 : i32
    %c0_i32_0 = arith.constant 0 : i32
    %c0_i32_1 = arith.constant 0 : i32
    return %c0_i32, %c0_i32_0 : i32, i32
  }
  func.func @transform_3(%arg0: i32, %arg1: i32) -> (i32, i32, i32, i32) {
    %c0_i32 = arith.constant 0 : i32
    %c0_i32_0 = arith.constant 0 : i32
    %c0_i32_1 = arith.constant 0 : i32
    return %arg0, %arg1, %c0_i32, %c0_i32_0 : i32, i32, i32, i32
  }
}

</mosaic_0001>

<bundles_post_ra>
// kernel: downsample_avg.1
= control target key start
LH: loop header
LB: loop body
LE: loop exit
PB: predicated region body
PF: predicated region fallthrough
CT: control target
= control target key end

     0   :  { %8 = vsyncpa [#allocation4], 0  ;;  %s1816_s0 = inlined_call_operand.vmem [shape: f32[2,16,8,8], index: 0, kind: input, shape index: {}]   ;;  %s1817_s1 = inlined_call_operand.vmem [shape: f32[8,8], index: 1, kind: input, shape index: {}]   ;;  %s1818_s2 = inlined_call_operand.vmem [shape: f32[1,8], index: 2, kind: input, shape index: {}]   ;;  %s1819_s3 = inlined_call_operand.hbm [shape: f32[2,8,8,8], index: 3, kind: output, shape index: {}]  }
   0x1   :  { %10 = vsyncpa [#allocation4 + $0x1], 0  ;;  %s1541_s12 = smov 0   ;;  %s1543_s13 = smov 0  }
   0x2   :  { %s1545_s14 = smov 0   ;;  %s1547_s15 = smov 0  }
   0x3   :  { %s1549_s16 = smov 0   ;;  %s1551_s17 = smov 0  }
   0x4 LB: > { %s1238_s18 = sadd.s32 4294967295, %s1512_s17   ;;  %s1239_s19 = sadd.s32 4294967294, %s1512_s17   ;;  %s1512_s17 = sphi %s1551_s17, %s16_s17   ;;  %s1508_s16 = sphi %s1549_s16, %s1826_s16   ;;  %s1504_s15 = sphi %s1547_s15, %s1825_s15   ;;  %s1500_s14 = sphi %s1545_s14, %s1824_s14   ;;  %s1496_s13 = sphi %s1543_s13, %s1823_s13   ;;  %s1492_s12 = sphi %s1541_s12, %s1822_s12  }
   0x5   : > { %s25_s20 = sadd.s32 1, %s1508_s16  ;;  %s37_s21 = sadd.s32 1, %s1500_s14 }
   0x6   : > { %p26_p0 = scmp.ge.s32.totalorder %s25_s20, 2  ;;  %p44_p1 = scmp.ne.s32.totalorder %s1500_s14, %s1496_s13 }
   0x7   : > { %p45_p2 = scmp.eq.s32.totalorder %s1512_s17, 0  ;;  %p118_p3 = scmp.eq.s32.totalorder %s1238_s18, 1 }
   0x8   : > { %s1828_s20 = smov (%p26_p0, %s25_s20), 0  ;;  %p123_p6 = scmp.ne.s32.totalorder %s1496_s13, %s1492_s12 }
   0x9   : > { %p46_p4 = por %p45_p2, %p44_p1  ;;  %p1580_p5 = por %p118_p3, %p44_p1 }
   0xa   : > { %s33_s23 = ssub.s32 %s1508_s16, %s1828_s20  ;;  %p124_p8 = scmp.eq.s32.totalorder %s1239_s19, 1 }
   0xb   : > { %p35_p7 = scmp.eq.s32.totalorder %s33_s23, 0  ;;  %p1241_p10 = scmp.ge.s32.totalorder %s1512_s17, 2 }
   0xc   : > { %p1591_p9 = por %p124_p8, %p123_p6 }
   0xd   : > { %s1589_s24 = scalar_select %p35_p7, %s1500_s14, %s37_s21  }
   0xe   : > { %146 = sbr.rel (%p1241_p10) target bundleno = 31 (0x1f), region = 24 }
  0x13   : > { %149 = sbr.rel (!%p46_p4) target bundleno = 31 (0x1f), region = 28  ;;  %s151_s26 = sand.u32 (%p46_p4), 1, %s1500_s14  }
  0x14   : > { %s1254_s27 = sshll.u32 (%p46_p4), %s1508_s16, 6  ;;  %s1242_s28 = sshll.u32 (%p46_p4), %s151_s26, 7 }
  0x15   : > { %s1603_s4 = scalar_lea.vmem (%p46_p4), %s1816_s0, %s1254_s27  ;;  %s153_s5 = scalar_lea.vmem (%p46_p4), [#allocation2], %s1242_s28 }
  0x16   : > { %v218_v0 = vld [vmem:[%s1603_s4] sm:$0xff] (%p46_p4)  ;;  %v220_v1 = vld [vmem:[%s1603_s4 + $0x8] sm:$0xff] (%p46_p4)  ;;  %v222_v2 = vld [vmem:[%s1603_s4 + $0x10] sm:$0xff] (%p46_p4) }
  0x17   : > { %219 = vst [vmem:[%s153_s5] sm:$0xff] (%p46_p4), %v218_v0  ;;  %221 = vst [vmem:[%s153_s5 + $0x8] sm:$0xff] (%p46_p4), %v220_v1  ;;  %v224_v3 = vld [vmem:[%s1603_s4 + $0x18] sm:$0xff] (%p46_p4)  ;;  %v226_v4 = vld [vmem:[%s1603_s4 + $0x20] sm:$0xff] (%p46_p4) }
  0x18   : > { %223 = vst [vmem:[%s153_s5 + $0x10] sm:$0xff] %v222_v2  ;;  %v228_v5 = vld [vmem:[%s1603_s4 + $0x28] sm:$0xff]  ;;  %225 = vst [vmem:[%s153_s5 + $0x18] sm:$0xff] %v224_v3  ;;  %v230_v6 = vld [vmem:[%s1603_s4 + $0x30] sm:$0xff] }
  0x19   : > { %227 = vst [vmem:[%s153_s5 + $0x20] sm:$0xff] %v226_v4  ;;  %229 = vst [vmem:[%s153_s5 + $0x28] sm:$0xff] %v228_v5  ;;  %v232_v7 = vld [vmem:[%s1603_s4 + $0x38] sm:$0xff]  ;;  %v234_v8 = vld [vmem:[%s1603_s4 + $0x80] sm:$0xff] }
  0x1a   : > { %231 = vst [vmem:[%s153_s5 + $0x30] sm:$0xff] %v230_v6  ;;  %233 = vst [vmem:[%s153_s5 + $0x38] sm:$0xff] %v232_v7  ;;  %v236_v9 = vld [vmem:[%s1603_s4 + $0x88] sm:$0xff]  ;;  %v238_v10 = vld [vmem:[%s1603_s4 + $0x90] sm:$0xff] }
  0x1b   : > { %235 = vst [vmem:[%s153_s5 + $0x40] sm:$0xff] %v234_v8  ;;  %v240_v11 = vld [vmem:[%s1603_s4 + $0x98] sm:$0xff]  ;;  %237 = vst [vmem:[%s153_s5 + $0x48] sm:$0xff] %v236_v9  ;;  %v242_v12 = vld [vmem:[%s1603_s4 + $0xa0] sm:$0xff] }
  0x1c   : > { %239 = vst [vmem:[%s153_s5 + $0x50] sm:$0xff] %v238_v10  ;;  %241 = vst [vmem:[%s153_s5 + $0x58] sm:$0xff] %v240_v11  ;;  %v244_v13 = vld [vmem:[%s1603_s4 + $0xa8] sm:$0xff]  ;;  %v246_v14 = vld [vmem:[%s1603_s4 + $0xb0] sm:$0xff] }
  0x1d   : > { %243 = vst [vmem:[%s153_s5 + $0x60] sm:$0xff] %v242_v12  ;;  %245 = vst [vmem:[%s153_s5 + $0x68] sm:$0xff] %v244_v13  ;;  %v248_v15 = vld [vmem:[%s1603_s4 + $0xb8] sm:$0xff] }
  0x1e   : > { %247 = vst [vmem:[%s153_s5 + $0x70] sm:$0xff] %v246_v14  ;;  %249 = vst [vmem:[%s153_s5 + $0x78] sm:$0xff] %v248_v15 }
  0x1f PF: > { %p1245_p11 = scmp.ge.s32.totalorder %s1512_s17, 1  ;;  %p254_p12 = scmp.lt.s32.totalorder %s1512_s17, 3 }
  0x21   : > { %p255_p13 = pnand %p1245_p11, %p254_p12 }
  0x22   : > { %s1627_s8 = sand.u32 (!%p255_p13), 1, %s1496_s13  }
  0x23   : > { %258 = sbr.rel (%p255_p13) target bundleno = 310 (0x136), region = 66  ;;  %s1246_s9 = sshll.u32 (!%p255_p13), %s1627_s8, 7 }
  0x24   : > { %s1636_s10 = scalar_lea.vmem (!%p255_p13), [#allocation2], %s1246_s9  ;;  %s1247_s19 = sshll.u32 (!%p255_p13), %s1627_s8, 6 }
  0x25   : > { %s1754_s21 = scalar_lea.vmem (!%p255_p13), [#allocation3], %s1247_s19  ;;  %s1117_s23 = scalar_lea.sflag (!%p255_p13), [#allocation4], %s1627_s8 }
  0x28   : > { %v329_v16 = vld [vmem:[%s1817_s1] sm:$0xff]  ;;  %vm304_vm0 = vcmask 64512   ;;  %v289_v20 = vld [vmem:[%s1636_s10 + $0x8] sm:$0xff]  ;;  %v290_v21 = vld [vmem:[%s1636_s10 + $0x10] sm:$0xff] }
  0x29   : > { %v1629_v17 = vand.u32 4294901760, %v329_v16  ;;  %v288_v19 = vld [vmem:[%s1636_s10] sm:$0xff]  ;;  %v306_v23 = vsel %vm304_vm0, %v289_v20, 0.0  ;;  %v291_v24 = vld [vmem:[%s1636_s10 + $0x18] sm:$0xff]  ;;  %v308_v25 = vsel %vm304_vm0, %v290_v21, 0.0  ;;  %v293_v27 = vld [vmem:[%s1636_s10 + $0x28] sm:$0xff] }
  0x2a   : > { %v305_v22 = vsel %vm304_vm0, %v288_v19, 0.0  ;;  %v292_v26 = vld [vmem:[%s1636_s10 + $0x20] sm:$0xff]  ;;  %v309_v30 = vsel %vm304_vm0, %v291_v24, 0.0  ;;  %v294_v32 = vld [vmem:[%s1636_s10 + $0x30] sm:$0xff]  ;;  %v295_v33 = vld [vmem:[%s1636_s10 + $0x38] sm:$0xff]  ;;  %v312_v36 = vsel %vm304_vm0, %v293_v27, 0.0 }
  0x2b   : > { %1310 = vmatprep.subr.mxu0 %v1629_v17  ;;  %v1634_v18 = vsub.f32 %v329_v16, %v1629_v17  ;;  %v307_v29 = vadd.f32 %v306_v23, %v305_v22  ;;  %v311_v31 = vsel %vm304_vm0, %v292_v26, 0.0  ;;  %v296_v34 = vld [vmem:[%s1636_s10 + $0x40] sm:$0xff]  ;;  %v310_v35 = vadd.f32 %v309_v30, %v308_v25  ;;  %v297_v39 = vld [vmem:[%s1636_s10 + $0x48] sm:$0xff]  ;;  %v298_v44 = vld [vmem:[%s1636_s10 + $0x50] sm:$0xff] }
  0x2c   : > { %1311 = vmatpush3.msra.mxu0 %v1629_v17  ;;  %v314_v37 = vsel %vm304_vm0, %v294_v32, 0.0  ;;  %v315_v38 = vsel %vm304_vm0, %v295_v33, 0.0  ;;  %v313_v42 = vadd.f32 %v312_v36, %v311_v31  ;;  %v317_v47 = vsel %vm304_vm0, %v296_v34, 0.0  ;;  %v299_v49 = vld [vmem:[%s1636_s10 + $0x58] sm:$0xff]  ;;  %v300_v50 = vld [vmem:[%s1636_s10 + $0x60] sm:$0xff]  ;;  %v301_v59 = vld [vmem:[%s1636_s10 + $0x68] sm:$0xff] }
  0x2d   : > { %v1649_v28 = vand.u32 4294901760, %v1634_v18  ;;  %1338 = vmatprep.subr.mxu0 %v1634_v18  ;;  %v338_v41 = vsel %vm304_vm0, %v307_v29, 0  ;;  %v316_v43 = vadd.f32 %v315_v38, %v314_v37  ;;  %v341_v46 = vsel %vm304_vm0, %v310_v35, 0  ;;  %v302_v4 = vld [vmem:[%s1636_s10 + $0x70] sm:$0xff]  ;;  %v303_v13 = vld [vmem:[%s1636_s10 + $0x78] sm:$0xff] }
  0x2e   : > { %v1665_v45 = vand.u32 4294901760, %v338_v41  ;;  %v318_v48 = vsel %vm304_vm0, %v297_v39, 0.0  ;;  %v1672_v52 = vand.u32 4294901760, %v341_v46  ;;  %v344_v53 = vsel %vm304_vm0, %v313_v42, 0 }
  0x2f   : > { %v541_v40 = vsub.f32 %v1634_v18, %v1649_v28  ;;  %v347_v54 = vsel %vm304_vm0, %v316_v43, 0  ;;  %v1680_v56 = vand.u32 4294901760, %v344_v53  ;;  %v319_v58 = vadd.f32 %v318_v48, %v317_v47 }
  0x30   : > { %v1677_v55 = vsub.f32 %v338_v41, %v1665_v45  ;;  %1326 = vmatprep.mubr.f32.mxu1 %v1665_v45  ;;  %v1682_v57 = vand.u32 4294901760, %v347_v54  ;;  %v1686_v60 = vsub.f32 %v341_v46, %v1672_v52  ;;  %v320_v61 = vsel %vm304_vm0, %v298_v44, 0.0 }
  0x31   : > { %v542_v51 = vand.u32 4294901760, %v541_v40  ;;  %v321_v62 = vsel %vm304_vm0, %v299_v49, 0.0  ;;  %v323_v63 = vsel %vm304_vm0, %v300_v50, 0.0  ;;  %v1693_v1 = vsub.f32 %v344_v53, %v1680_v56 }
  0x32   : > { %v429_v0 = vand.u32 4294901760, %v1677_v55  ;;  %v1696_v2 = vsub.f32 %v347_v54, %v1682_v57  ;;  %v350_v3 = vsel %vm304_vm0, %v319_v58, 0  ;;  %v439_v5 = vand.u32 4294901760, %v1686_v60 }
  0x33   : > { %1324 = vmatprep.subr.mxu1 %v542_v51  ;;  %v1703_v6 = vand.u32 4294901760, %v350_v3  ;;  %v322_v7 = vadd.f32 %v321_v62, %v320_v61  ;;  %v324_v8 = vsel %vm304_vm0, %v301_v59, 0.0  ;;  %v449_v10 = vand.u32 4294901760, %v1693_v1 }
  0x34   : > { %1325 = vmatpush3.msra.mxu1 %v542_v51  ;;  %v430_v9 = vsub.f32 %v1677_v55, %v429_v0  ;;  %v459_v11 = vand.u32 4294901760, %v1696_v2  ;;  %v325_v12 = vadd.f32 %v324_v8, %v323_v63  ;;  %v440_v14 = vsub.f32 %v1686_v60, %v439_v5 }
  0x35   : > { %1327 = vmatmul.mubr.f32.vlgmr.msra.gmra.mxu1 %v1672_v52  ;;  %1352 = vmatprep.subr.mxu1 %v1629_v17  ;;  %v468_v15 = vsub.f32 %v350_v3, %v1703_v6  ;;  %v353_v16 = vsel %vm304_vm0, %v322_v7, 0  ;;  %v326_v19 = vsel %vm304_vm0, %v302_v4, 0.0  ;;  %v450_v21 = vsub.f32 %v1693_v1, %v449_v10  ;;  %v1248_v3 = vld [vmem:[%s1818_s2] ss:$0 sm:$0xff] }
  0x36   : > { %1353 = vmatpush3.msra.mxu1 %v1629_v17  ;;  %1329 = vmatprep.mubr.f32.mxu1 %v1680_v56  ;;  %v431_v20 = vand.u32 4294901760, %v430_v9  ;;  %v460_v22 = vsub.f32 %v1696_v2, %v459_v11  ;;  %v1719_v23 = vand.u32 4294901760, %v353_v16  ;;  %v441_v24 = vand.u32 4294901760, %v440_v14 }
  0x37   : > { %1380 = vmatprep.subr.mxu1 %v1629_v17  ;;  %v469_v25 = vand.u32 4294901760, %v468_v15  ;;  %v356_v26 = vsel %vm304_vm0, %v325_v12, 0  ;;  %v327_v27 = vsel %vm304_vm0, %v303_v13, 0.0  ;;  %v451_v29 = vand.u32 4294901760, %v450_v21 }
  0x38   : > { %1312 = vmatprep.mubr.f32.mxu0 %v431_v20  ;;  %v478_v30 = vsub.f32 %v353_v16, %v1719_v23  ;;  %v487_v31 = vand.u32 4294901760, %v356_v26  ;;  %v461_v32 = vand.u32 4294901760, %v460_v22  ;;  %v328_v34 = vadd.f32 %v327_v27, %v326_v19 }
  0x39   : > { %1330 = vmatmul.mubr.f32.gmra.mxu1 %v1682_v57  ;;  %1313 = vmatmul.mubr.f32.vlgmr.msra.gmra.mxu0 %v441_v24  ;;  %v470_v33 = vsub.f32 %v468_v15, %v469_v25 }
  0x3a   : > { %1332 = vmatprep.mubr.f32.mxu1 %v1703_v6  ;;  %1339 = vmatpush3.msra.mxu0 %v1634_v18  ;;  %v479_v35 = vand.u32 4294901760, %v478_v30  ;;  %v488_v36 = vsub.f32 %v356_v26, %v487_v31  ;;  %v359_v38 = vsel %vm304_vm0, %v328_v34, 0 }
  0x3b   : > { %1315 = vmatprep.mubr.f32.mxu0 %v451_v29  ;;  %v471_v37 = vand.u32 4294901760, %v470_v33  ;;  %1366 = vmatprep.subr.mxu0 %v1649_v28  ;;  %v497_v41 = vand.u32 4294901760, %v359_v38 }
  0x3c   : > { %v480_v39 = vsub.f32 %v478_v30, %v479_v35  ;;  %v489_v40 = vand.u32 4294901760, %v488_v36 }
  0x3d   : > { %1333 = vmatmul.mubr.f32.gmra.mxu1 %v1719_v23  ;;  %1316 = vmatmul.mubr.f32.gmra.mxu0 %v461_v32  ;;  %v498_v44 = vsub.f32 %v359_v38, %v497_v41 }
  0x3e   : > { %1335 = vmatprep.mubr.f32.mxu1 %v487_v31  ;;  %1318 = vmatprep.mubr.f32.mxu0 %v471_v37  ;;  %v481_v42 = vand.u32 4294901760, %v480_v39  ;;  %v490_v43 = vsub.f32 %v488_v36, %v489_v40 }
  0x3f   : > { %v499_v46 = vand.u32 4294901760, %v498_v44 }
  0x40   : > { %v491_v18 = vand.u32 4294901760, %v490_v43 }
  0x41   : > { %1336 = vmatmul.mubr.f32.gmra.mxu1 %v497_v41  ;;  %1319 = vmatmul.mubr.f32.gmra.mxu0 %v481_v42  ;;  %v500_v47 = vsub.f32 %v498_v44, %v499_v46 }
  0x42   : > { %1354 = vmatprep.mubr.f32.mxu1 %v429_v0  ;;  %1321 = vmatprep.mubr.f32.mxu0 %v491_v18 }
  0x43   : > { %v501_v48 = vand.u32 4294901760, %v500_v47 }
  0x45   : > { %1355 = vmatmul.mubr.f32.vlgmr.msra.gmra.mxu1 %v439_v5  ;;  %1322 = vmatmul.mubr.f32.gmra.mxu0 %v501_v48 }
  0x46   : > { %1381 = vmatpush3.msra.mxu1 %v1629_v17  ;;  %1357 = vmatprep.mubr.f32.mxu1 %v449_v10 }
  0x47   : > { %1340 = vmatprep.mubr.f32.mxu0 %v1677_v55 }
  0x49   : > { %1358 = vmatmul.mubr.f32.gmra.mxu1 %v459_v11  ;;  %1341 = vmatmul.mubr.f32.vlgmr.msra.gmra.mxu0 %v1686_v60 }
  0x4a   : > { %1360 = vmatprep.mubr.f32.mxu1 %v469_v25  ;;  %1367 = vmatpush3.msra.mxu0 %v1649_v28 }
  0x4b   : > { %1343 = vmatprep.mubr.f32.mxu0 %v1693_v1 }
  0x4d   : > { %1361 = vmatmul.mubr.f32.gmra.mxu1 %v479_v35  ;;  %1344 = vmatmul.mubr.f32.gmra.mxu0 %v1696_v2 }
  0x4e   : > { %1363 = vmatprep.mubr.f32.mxu1 %v489_v40  ;;  %1346 = vmatprep.mubr.f32.mxu0 %v468_v15 }
  0x51   : > { %1364 = vmatmul.mubr.f32.gmra.mxu1 %v499_v46  ;;  %1347 = vmatmul.mubr.f32.gmra.mxu0 %v478_v30 }
  0x52   : > { %1382 = vmatprep.mubr.f32.mxu1 %v1665_v45  ;;  %1349 = vmatprep.mubr.f32.mxu0 %v488_v36 }
  0x55   : > { %1383 = vmatmul.mubr.f32.vlgmr.msra.gmra.mxu1 %v1672_v52  ;;  %1350 = vmatmul.mubr.f32.gmra.mxu0 %v498_v44 }
  0x56   : > { %1385 = vmatprep.mubr.f32.mxu1 %v1680_v56  ;;  %1368 = vmatprep.mubr.f32.mxu0 %v1665_v45 }
  0x59   : > { %1386 = vmatmul.mubr.f32.gmra.mxu1 %v1682_v57  ;;  %1369 = vmatmul.mubr.f32.vlgmr.msra.gmra.mxu0 %v1672_v52 }
  0x5a   : > { %1388 = vmatprep.mubr.f32.mxu1 %v1703_v6  ;;  %1371 = vmatprep.mubr.f32.mxu0 %v1680_v56 }
  0x5d   : > { %1389 = vmatmul.mubr.f32.gmra.mxu1 %v1719_v23  ;;  %1372 = vmatmul.mubr.f32.gmra.mxu0 %v1682_v57 }
  0x5e   : > { %1391 = vmatprep.mubr.f32.mxu1 %v487_v31  ;;  %1374 = vmatprep.mubr.f32.mxu0 %v1703_v6 }
  0x61   : > { %1392 = vmatmul.mubr.f32.gmra.mxu1 %v497_v41  ;;  %1375 = vmatmul.mubr.f32.gmra.mxu0 %v1719_v23 }
  0x62   : > { %1377 = vmatprep.mubr.f32.mxu0 %v487_v31 }
  0x65   : > { %1378 = vmatmul.mubr.f32.gmra.mxu0 %v497_v41 }
  0xf5   : > { %v1328_v17 = vpop.f32.mrf.mxu1 }
  0xf7   : > { %v579_v28 = vpop.f32.mrf.mxu1 }
  0xf9   : > { %v1331_v45 = vpop.f32.mrf.mxu1  ;;  %v1314_v49 = vpop.f32.mrf.mxu0 }
  0xfa   : > { %v444_v8 = vadd.f32 %v1314_v49, %v1248_v3 }
  0xfb   : > { %v591_v50 = vpop.f32.mrf.mxu1  ;;  %v433_v51 = vpop.f32.mrf.mxu0 }
  0xfc   : > { %v434_v11 = vadd.f32 %v1248_v3, %v433_v51  ;;  %v586_v14 = vadd.f32 %v1328_v17, %v444_v8 }
  0xfd   : > { %v1334_v52 = vpop.f32.mrf.mxu1  ;;  %v1317_v53 = vpop.f32.mrf.mxu0 }
  0xfe   : > { %v464_v15 = vadd.f32 %v1317_v53, %v1248_v3  ;;  %v580_v20 = vadd.f32 %v579_v28, %v434_v11 }
  0xff   : > { %v603_v54 = vpop.f32.mrf.mxu1  ;;  %v453_v55 = vpop.f32.mrf.mxu0 }
 0x100   : > { %v454_v21 = vadd.f32 %v1248_v3, %v453_v55  ;;  %v598_v25 = vadd.f32 %v1331_v45, %v464_v15 }
 0x101   : > { %v1337_v56 = vpop.f32.mrf.mxu1  ;;  %v1320_v58 = vpop.f32.mrf.mxu0 }
 0x102   : > { %v484_v26 = vadd.f32 %v1320_v58, %v1248_v3  ;;  %v592_v32 = vadd.f32 %v591_v50, %v454_v21 }
 0x103   : > { %v615_v57 = vpop.f32.mrf.mxu1  ;;  %v473_v59 = vpop.f32.mrf.mxu0 }
 0x104   : > { %v474_v29 = vadd.f32 %v1248_v3, %v473_v59  ;;  %v610_v38 = vadd.f32 %v1334_v52, %v484_v26 }
 0x105   : > { %v1356_v60 = vpop.f32.mrf.mxu1  ;;  %v1323_v62 = vpop.f32.mrf.mxu0 }
 0x106   : > { %v504_v35 = vadd.f32 %v1323_v62, %v1248_v3  ;;  %v604_v42 = vadd.f32 %v603_v54, %v474_v29 }
 0x107   : > { %v818_v61 = vpop.f32.mrf.mxu1  ;;  %v493_v0 = vpop.f32.mrf.mxu0 }
 0x108   : > { %v494_v43 = vadd.f32 %v1248_v3, %v493_v0  ;;  %v622_v17 = vadd.f32 %v1337_v56, %v504_v35 }
 0x109   : > { %v1359_v63 = vpop.f32.mrf.mxu1  ;;  %v1342_v2 = vpop.f32.mrf.mxu0 }
 0x10a   : > { %v703_v22 = vadd.f32 %v1342_v2, %v586_v14  ;;  %v616_v53 = vadd.f32 %v615_v57, %v494_v43 }
 0x10b   : > { %v834_v1 = vpop.f32.mrf.mxu1  ;;  %v695_v4 = vpop.f32.mrf.mxu0 }
 0x10c   : > { %v696_v27 = vadd.f32 %v695_v4, %v580_v20  ;;  %v827_v33 = vadd.f32 %v1356_v60, %v703_v22 }
 0x10d   : > { %v1362_v5 = vpop.f32.mrf.mxu1  ;;  %v1345_v6 = vpop.f32.mrf.mxu0 }
 0x10e   : > { %v717_v34 = vadd.f32 %v1345_v6, %v598_v25  ;;  %v819_v39 = vadd.f32 %v818_v61, %v696_v27 }
 0x10f   : > { %v850_v7 = vpop.f32.mrf.mxu1  ;;  %v709_v9 = vpop.f32.mrf.mxu0 }
 0x110   : > { %v710_v40 = vadd.f32 %v709_v9, %v592_v32  ;;  %v843_v18 = vadd.f32 %v1359_v63, %v717_v34 }
 0x111   : > { %v1365_v10 = vpop.f32.mrf.mxu1  ;;  %v1348_v12 = vpop.f32.mrf.mxu0 }
 0x112   : > { %v731_v46 = vadd.f32 %v1348_v12, %v610_v38  ;;  %v835_v49 = vadd.f32 %v834_v1, %v710_v40 }
 0x113   : > { %v1751_v13 = vpop.f32.mrf.mxu1  ;;  %v723_v16 = vpop.f32.mrf.mxu0 }
 0x114   : > { %v724_v50 = vadd.f32 %v723_v16, %v604_v42  ;;  %v859_v55 = vadd.f32 %v1362_v5, %v731_v46 }
 0x115   : > { %v1384_v19 = vpop.f32.mrf.mxu1  ;;  %v1351_v23 = vpop.f32.mrf.mxu0 }
 0x116   : > { %v745_v58 = vadd.f32 %v1351_v23, %v622_v17  ;;  %v851_v62 = vadd.f32 %v850_v7, %v724_v50 }
 0x117   : > { %v1062_v24 = vpop.f32.mrf.mxu1  ;;  %v737_v30 = vpop.f32.mrf.mxu0 }
 0x118   : > { %v738_v63 = vadd.f32 %v737_v30, %v616_v53  ;;  %v875_v57 = vadd.f32 %v1365_v10, %v745_v58 }
 0x119   : > { %v1387_v31 = vpop.f32.mrf.mxu1  ;;  %v1370_v36 = vpop.f32.mrf.mxu0 }
 0x11a   : > { %v955_v41 = vadd.f32 %v1370_v36, %v827_v33  ;;  %v867_v8 = vadd.f32 %v1751_v13, %v738_v63 }
 0x11b   : > { %v1074_v37 = vpop.f32.mrf.mxu1  ;;  %v948_v44 = vpop.f32.mrf.mxu0 }
 0x11c   : > { %v1069_v47 = vadd.f32 %v1384_v19, %v955_v41  ;;  %v949_v48 = vadd.f32 %v948_v44, %v819_v39 }
 0x11d   : > { %v1373_v28 = vpop.f32.mrf.mxu0  ;;  %v1390_v45 = vpop.f32.mrf.mxu1 }
 0x11e   : > { %1109 = vst.msk [vmem:[%s1754_s21 + $0x8] sm:$0xff] %vm304_vm0, %v1069_v47  ;;  %v1063_v51 = vadd.f32 %v1062_v24, %v949_v48  ;;  %v967_v52 = vadd.f32 %v1373_v28, %v843_v18 }
 0x11f   : > { %v960_v54 = vpop.f32.mrf.mxu0  ;;  %v1086_v61 = vpop.f32.mrf.mxu1 }
 0x120   : > { %1108 = vst.msk [vmem:[%s1754_s21] sm:$0xff] %vm304_vm0, %v1063_v51  ;;  %v1081_v56 = vadd.f32 %v1387_v31, %v967_v52  ;;  %v961_v59 = vadd.f32 %v960_v54, %v835_v49 }
 0x121   : > { %v1376_v60 = vpop.f32.mrf.mxu0  ;;  %v1393_v6 = vpop.f32.mrf.mxu1 }
 0x122   : > { %1111 = vst.msk [vmem:[%s1754_s21 + $0x18] sm:$0xff] %vm304_vm0, %v1081_v56  ;;  %v1075_v0 = vadd.f32 %v1074_v37, %v961_v59  ;;  %v979_v1 = vadd.f32 %v1376_v60, %v859_v55 }
 0x123   : > { %v972_v2 = vpop.f32.mrf.mxu0  ;;  %v1098_v10 = vpop.f32.mrf.mxu1 }
 0x124   : > { %1110 = vst.msk [vmem:[%s1754_s21 + $0x10] sm:$0xff] %vm304_vm0, %v1075_v0  ;;  %v1093_v3 = vadd.f32 %v1390_v45, %v979_v1  ;;  %v973_v4 = vadd.f32 %v972_v2, %v851_v62 }
 0x125   : > { %v1379_v5 = vpop.f32.mrf.mxu0 }
 0x126   : > { %1113 = vst.msk [vmem:[%s1754_s21 + $0x28] sm:$0xff] %vm304_vm0, %v1093_v3  ;;  %v1087_v7 = vadd.f32 %v1086_v61, %v973_v4  ;;  %v991_v9 = vadd.f32 %v1379_v5, %v875_v57 }
 0x127   : > { %v984_v11 = vpop.f32.mrf.mxu0 }
 0x128   : > { %1112 = vst.msk [vmem:[%s1754_s21 + $0x20] sm:$0xff] %vm304_vm0, %v1087_v7  ;;  %v1105_v12 = vadd.f32 %v1393_v6, %v991_v9  ;;  %v985_v14 = vadd.f32 %v984_v11, %v867_v8 }
 0x12a   : > { %1115 = vst.msk [vmem:[%s1754_s21 + $0x38] sm:$0xff] %vm304_vm0, %v1105_v12  ;;  %v1099_v15 = vadd.f32 %v1098_v10, %v985_v14 }
 0x12c   : > { %1114 = vst.msk [vmem:[%s1754_s21 + $0x30] sm:$0xff] %vm304_vm0, %v1099_v15 }
 0x12d   : > { %s1255_s26 = sshll.u32 %s1504_s15, 9  ;;  %s1143_s27 = sshll.u32 %s1754_s21, 4  ;;  %s1144_s27 = int_to_ptr.vmem [resolvable:$true] %s1143_s27 }
 0x12e   : > { %s1132_s30 = scalar_lea.hbm %s1819_s3, %s1255_s26  ;;  %s1514_s4 = smov 512  }
 0x12f   : > { %1394 = sst [smem:[#allocation6]] (%p1580_p5), %s1514_s4  ;;  %s1515_s5 = smov 1024  }
 0x130   : > { %1395 = sst [smem:[#allocation6 + $0x1]] (%p1580_p5), %s1515_s5  ;;  %s1516_s6 = smov 4  }
 0x131   : > { %1396 = sst [smem:[#allocation6 + $0x2]] (%p1580_p5), %s1516_s6  ;;  %s1517_s7 = smov 128  }
 0x132   : > { %1397 = sst [smem:[#allocation6 + $0x3]] (%p1580_p5), %s1517_s7  ;;  %s1518_s15 = smov 8  }
 0x133   : > { %1398 = sst [smem:[#allocation6 + $0x4]] (%p1580_p5), %s1517_s7  ;;  %s1519_s8 = smov 131072  }
 0x134   : > { %1399 = sst [smem:[#allocation6 + $0x5]] (%p1580_p5), %s1518_s15  ;;  %s1520_s9 = smov 0  }
 0x135   : > { %1400 = dma.general (%p1580_p5), %s1144_s27, 1024, %s1132_s30, %s1117_s23, %s1519_s8, [#allocation6], %s1520_s9, 0  }
 0x136 PF: > { %s1171_s10 = sand.u32 1, %s1492_s12   ;;  %p1403_p0 = pnand %p1241_p10, %p1591_p9 }
 0x137   : > { %s1172_s11 = scalar_lea.sflag [#allocation4], %s1171_s10 }
 0x138   : > { %p1404_p1 = pneg %p1403_p0 }
 0x13a   : > { %1487 = dma.done.wait (%p1404_p1), %s1172_s11, 1024  }
 0x13b   : > { %1489 = vsyncadd (%p1404_p1), %s1172_s11, 4294966272  ;;  %s16_s17 = sadd.s32 1, %s1512_s17   ;;  %s1822_s12 = smov %s1496_s13 }
 0x13c   : > { %p13_p2 = scmp.ge.s32.totalorder %s16_s17, 4   ;;  %s1823_s13 = smov %s1500_s14 }
 0x13d   : > { %s1824_s14 = smov %s1589_s24  ;;  %s1825_s15 = smov %s1508_s16 }
 0x13e   : > { %s1826_s16 = smov %s1828_s20  ;;  %15 = sbr.rel (!%p13_p2) target bundleno = 4 (0x4), region = 115 }
 0x143   :  { %1177 = vsyncpa [#allocation4], 1 }
 0x144   :  { %1179 = vsyncpa [#allocation4 + $0x1], 1 }

</bundles_post_ra>
